<compile_context>
chip_gen: v7x
topology: tpu7x:2x2x1
jax: 0.10.0
libtpu: 0.0.40
codegen_flags: <defaults>
</compile_context>

<pallas_src>
import math
import functools

import jax
import jax.numpy as jnp
from jax.experimental import pallas as pl
from jax.experimental.pallas import tpu as pltpu


_NEG_INF = -1e30                      # finite mask value (avoids exp(-inf - -inf) = nan in online softmax)
_VMEM_LIMIT = 48 * 1024 * 1024        # > v6e 32MiB scoped default, < v7x 64MiB physical


def _pick_tile(dim, prefs):
    """Largest preferred tile that exactly divides `dim`, else the full dim."""
    for p in prefs:
        if dim >= p and dim % p == 0:
            return p
    return dim


def _cparams(sem):
    return pltpu.CompilerParams(dimension_semantics=sem, vmem_limit_bytes=_VMEM_LIMIT)


# ----------------------------- Pallas kernels -----------------------------

def _rmsnorm_kernel(x_ref, g_ref, o_ref, *, eps):
    x = x_ref[...].astype(jnp.float32)                       # (tm, D)
    ms = jnp.mean(x * x, axis=-1, keepdims=True)
    o_ref[...] = ((x * jax.lax.rsqrt(ms + eps)) * g_ref[...]).astype(o_ref.dtype)


def _norm_matmul_kernel(x_ref, g_ref, w_ref, o_ref, *, eps):
    # Fused RMSNorm + projection: normalize x tile in f32, feed bf16 to MXU.
    x = x_ref[...].astype(jnp.float32)                       # (tm, D)
    ms = jnp.mean(x * x, axis=-1, keepdims=True)
    xn = (x * jax.lax.rsqrt(ms + eps)) * g_ref[...]
    o_ref[...] = jnp.dot(xn.astype(jnp.bfloat16), w_ref[...],
                         preferred_element_type=jnp.float32).astype(o_ref.dtype)


def _matmul_kernel(a_ref, b_ref, o_ref, acc_ref):
    @pl.when(pl.program_id(2) == 0)
    def _init():
        acc_ref[...] = jnp.zeros_like(acc_ref)

    acc_ref[...] += jnp.dot(a_ref[...], b_ref[...],
                            preferred_element_type=jnp.float32)

    @pl.when(pl.program_id(2) == pl.num_programs(2) - 1)
    def _fin():
        o_ref[...] = acc_ref[...].astype(o_ref.dtype)


def _ffn_kernel(x_ref, g_ref, w1_ref, w3_ref, w2_ref, o_ref, xn_ref, acc_ref, *, eps):
    # Fused ffn_norm + SwiGLU, tiled over the hidden (reduction) axis.
    j = pl.program_id(1)

    @pl.when(j == 0)
    def _init():
        x = x_ref[...].astype(jnp.float32)
        ms = jnp.mean(x * x, axis=-1, keepdims=True)
        xn_ref[...] = ((x * jax.lax.rsqrt(ms + eps)) * g_ref[...]).astype(jnp.bfloat16)
        acc_ref[...] = jnp.zeros_like(acc_ref)

    xn = xn_ref[...]                                          # (tm, D) bf16
    h1 = jnp.dot(xn, w1_ref[...], preferred_element_type=jnp.float32)
    h3 = jnp.dot(xn, w3_ref[...], preferred_element_type=jnp.float32)
    gate = (h1 * jax.nn.sigmoid(h1)) * h3                     # SiLU(w1 x) * (w3 x), f32
    acc_ref[...] += jnp.dot(gate.astype(jnp.bfloat16), w2_ref[...],
                            preferred_element_type=jnp.float32)

    @pl.when(j == pl.num_programs(1) - 1)
    def _fin():
        o_ref[...] = acc_ref[...].astype(o_ref.dtype)


def _attn_kernel(q_ref, k_ref, v_ref, o_ref, m_ref, l_ref, acc_ref,
                 *, scale, start_pos, tkv):
    # Flash-style attention: online softmax over KV tiles, causal mask built in-kernel.
    kv = pl.program_id(2)

    @pl.when(kv == 0)
    def _init():
        m_ref[...] = jnp.full_like(m_ref, _NEG_INF)
        l_ref[...] = jnp.zeros_like(l_ref)
        acc_ref[...] = jnp.zeros_like(acc_ref)

    q = q_ref[0, 0]                                           # (S, hd)  bf16
    k = k_ref[0, 0]                                           # (tkv, hd) bf16
    v = v_ref[0, 0]                                           # (tkv, hd) bf16

    # Contract last dims directly (no .T / XLU transpose).
    s = jax.lax.dot_general(q, k, (((1,), (1,)), ((), ())),
                            preferred_element_type=jnp.float32) * scale  # (S, tkv)

    Sq, Tk = s.shape
    q_pos = start_pos + jax.lax.broadcasted_iota(jnp.int32, (Sq, Tk), 0)
    k_pos = kv * tkv + jax.lax.broadcasted_iota(jnp.int32, (Sq, Tk), 1)
    s = jnp.where(k_pos <= q_pos, s, _NEG_INF)                # causal (covers cache prefix too)

    m_prev = m_ref[...]
    m_new = jnp.maximum(m_prev, jnp.max(s, axis=-1, keepdims=True))
    alpha = jnp.exp(m_prev - m_new)
    p = jnp.exp(s - m_new)
    l_ref[...] = alpha * l_ref[...] + jnp.sum(p, axis=-1, keepdims=True)
    acc_ref[...] = alpha * acc_ref[...] + jnp.dot(p.astype(v.dtype), v,
                                                  preferred_element_type=jnp.float32)
    m_ref[...] = m_new

    @pl.when(kv == pl.num_programs(2) - 1)
    def _fin():
        o_ref[0, 0] = (acc_ref[...] *
                       pl.reciprocal(l_ref[...], approx=True)).astype(o_ref.dtype)


# ----------------------------- Pallas wrappers -----------------------------

def pallas_rmsnorm(x, g, eps):
    M, D = x.shape
    tm = _pick_tile(M, (512, 256, 128))
    return pl.pallas_call(
        functools.partial(_rmsnorm_kernel, eps=eps),
        grid=(M // tm,),
        in_specs=[pl.BlockSpec((tm, D), lambda i: (i, 0)),
                  pl.BlockSpec((1, D), lambda i: (0, 0))],
        out_specs=pl.BlockSpec((tm, D), lambda i: (i, 0)),
        out_shape=jax.ShapeDtypeStruct((M, D), jnp.float32),
        compiler_params=_cparams(("parallel",)),
    )(x, g.reshape(1, D).astype(jnp.float32))


def pallas_norm_matmul(x, g, w, eps, out_dtype=jnp.bfloat16):
    M, D = x.shape
    N = w.shape[1]
    tm = _pick_tile(M, (256, 128))
    tn = _pick_tile(N, (512, 256, 128))
    return pl.pallas_call(
        functools.partial(_norm_matmul_kernel, eps=eps),
        grid=(M // tm, N // tn),
        in_specs=[pl.BlockSpec((tm, D), lambda i, j: (i, 0)),
                  pl.BlockSpec((1, D), lambda i, j: (0, 0)),
                  pl.BlockSpec((D, tn), lambda i, j: (0, j))],
        out_specs=pl.BlockSpec((tm, tn), lambda i, j: (i, j)),
        out_shape=jax.ShapeDtypeStruct((M, N), out_dtype),
        compiler_params=_cparams(("parallel", "parallel")),
    )(x, g.reshape(1, D).astype(jnp.float32), w.astype(jnp.bfloat16))


def pallas_matmul(a, b, out_dtype=jnp.float32):
    M, K = a.shape
    N = b.shape[1]
    tm = _pick_tile(M, (256, 128))
    tn = _pick_tile(N, (256, 128))
    tk = _pick_tile(K, (512, 256, 128))
    return pl.pallas_call(
        _matmul_kernel,
        grid=(M // tm, N // tn, K // tk),
        in_specs=[pl.BlockSpec((tm, tk), lambda i, j, k: (i, k)),
                  pl.BlockSpec((tk, tn), lambda i, j, k: (k, j))],
        out_specs=pl.BlockSpec((tm, tn), lambda i, j, k: (i, j)),
        out_shape=jax.ShapeDtypeStruct((M, N), out_dtype),
        scratch_shapes=[pltpu.VMEM((tm, tn), jnp.float32)],
        compiler_params=_cparams(("parallel", "parallel", "arbitrary")),
    )(a.astype(jnp.bfloat16), b.astype(jnp.bfloat16))


def pallas_ffn(x, g, w1, w3, w2, eps, out_dtype=jnp.float32):
    M, D = x.shape
    H = w1.shape[1]
    tm = _pick_tile(M, (256, 128))
    th = _pick_tile(H, (512, 256, 128))
    return pl.pallas_call(
        functools.partial(_ffn_kernel, eps=eps),
        grid=(M // tm, H // th),
        in_specs=[pl.BlockSpec((tm, D), lambda i, j: (i, 0)),
                  pl.BlockSpec((1, D), lambda i, j: (0, 0)),
                  pl.BlockSpec((D, th), lambda i, j: (0, j)),
                  pl.BlockSpec((D, th), lambda i, j: (0, j)),
                  pl.BlockSpec((th, D), lambda i, j: (j, 0))],
        out_specs=pl.BlockSpec((tm, D), lambda i, j: (i, 0)),
        out_shape=jax.ShapeDtypeStruct((M, D), out_dtype),
        scratch_shapes=[pltpu.VMEM((tm, D), jnp.bfloat16),
                        pltpu.VMEM((tm, D), jnp.float32)],
        compiler_params=_cparams(("parallel", "arbitrary")),
    )(x, g.reshape(1, D).astype(jnp.float32), w1.astype(jnp.bfloat16),
      w3.astype(jnp.bfloat16), w2.astype(jnp.bfloat16))


def pallas_flash_attention(q, k, v, scale, start_pos):
    # q: (B, H, S, hd); k, v: (B, H, T, hd).  Output bf16 (feeds the wo matmul).
    B, H, S, hd = q.shape
    T = k.shape[2]
    tkv = _pick_tile(T, (512, 256, 128))
    # TODO(synk): for hd < 128 fold several heads per grid step for lane-dense stores.
    kern = functools.partial(_attn_kernel, scale=scale, start_pos=start_pos, tkv=tkv)
    return pl.pallas_call(
        kern,
        grid=(B, H, T // tkv),
        in_specs=[pl.BlockSpec((1, 1, S, hd), lambda b, h, kv: (b, h, 0, 0)),
                  pl.BlockSpec((1, 1, tkv, hd), lambda b, h, kv: (b, h, kv, 0)),
                  pl.BlockSpec((1, 1, tkv, hd), lambda b, h, kv: (b, h, kv, 0))],
        out_specs=pl.BlockSpec((1, 1, S, hd), lambda b, h, kv: (b, h, 0, 0)),
        out_shape=jax.ShapeDtypeStruct((B, H, S, hd), jnp.bfloat16),
        scratch_shapes=[pltpu.VMEM((S, 1), jnp.float32),
                        pltpu.VMEM((S, 1), jnp.float32),
                        pltpu.VMEM((S, hd), jnp.float32)],
        compiler_params=_cparams(("parallel", "parallel", "arbitrary")),
    )(q.astype(jnp.bfloat16), k.astype(jnp.bfloat16), v.astype(jnp.bfloat16))


# ----------------------------- Plain-JAX glue -----------------------------

def precompute_freqs(head_dim, end, theta=10000.0):
    freqs = 1.0 / theta ** (jnp.arange(0, head_dim, 2)[: head_dim // 2]
                            .astype(jnp.float32) / head_dim)
    t = jnp.arange(end, dtype=jnp.float32)
    f = jnp.outer(t, freqs)                                   # (end, hd//2)
    return jnp.cos(f), jnp.sin(f)


def _rope_rotate_half(x, cos, sin):
    # x: (B, S, H, hd) with head dim pre-permuted to [even coords | odd coords].
    hd = x.shape[-1]
    x1, x2 = x[..., :hd // 2], x[..., hd // 2:]
    c = cos[None, :, None, :]
    s = sin[None, :, None, :]
    return jnp.concatenate([x1 * c - x2 * s, x2 * c + x1 * s], axis=-1)


def apply_rotary_emb_interleaved(xq, xk, cos, sin):
    # Reference (PyTorch complex-view) formulation, used by the pure-JAX path.
    def rot(x):
        x = x.astype(jnp.float32)
        xr = x.reshape(*x.shape[:-1], -1, 2)
        xe, xo = xr[..., 0], xr[..., 1]
        c = cos[None, :, None, :]
        s = sin[None, :, None, :]
        oe = xe * c - xo * s
        oo = xe * s + xo * c
        return jnp.stack([oe, oo], axis=-1).reshape(x.shape)
    return rot(xq), rot(xk)


def _bf16_dot(a, b):
    return jnp.dot(a.astype(jnp.bfloat16), b.astype(jnp.bfloat16),
                   preferred_element_type=jnp.float32)


def _rmsnorm_ref(x, w, eps):
    ms = jnp.mean(x * x, axis=-1, keepdims=True)
    return (x * jax.lax.rsqrt(ms + eps)) * w[None, :]


# ----------------------------- Transformer blocks -----------------------------

def block_forward_pallas(x, lp, start_pos, cos, sin, n_heads, eps):
    B, S, D = x.shape
    hd = D // n_heads
    x2 = x.reshape(B * S, D)

    # Fused attention_norm + QKV projection (wq|wk|wv concatenated, one activation read).
    qkv = pallas_norm_matmul(x2, lp["attn_norm"], lp["wqkv"], eps,
                             out_dtype=jnp.bfloat16)                    # (B*S, 3D)
    xq = qkv[:, :D].reshape(B, S, n_heads, hd)
    xk = qkv[:, D:2 * D].reshape(B, S, n_heads, hd)
    xv = qkv[:, 2 * D:].reshape(B, S, n_heads, hd)

    # Rotate-half RoPE on pre-permuted q/k (mathematically equal to the interleaved form).
    xq = _rope_rotate_half(xq.astype(jnp.float32), cos, sin)
    xk = _rope_rotate_half(xk.astype(jnp.float32), cos, sin)

    if start_pos > 0:
        # Fresh zero-initialized cache prefix (matches the PyTorch module semantics).
        zeros_k = jnp.zeros((B, start_pos, n_heads, hd), xk.dtype)
        zeros_v = jnp.zeros((B, start_pos, n_heads, hd), xv.dtype)
        keys = jnp.concatenate([zeros_k, xk], axis=1)
        values = jnp.concatenate([zeros_v, xv], axis=1)
    else:
        keys, values = xk, xv

    q = jnp.transpose(xq, (0, 2, 1, 3))                       # (B, H, S, hd)
    k = jnp.transpose(keys, (0, 2, 1, 3))                     # (B, H, T, hd)
    v = jnp.transpose(values, (0, 2, 1, 3))

    attn = pallas_flash_attention(q, k, v, 1.0 / math.sqrt(hd), start_pos)
    attn = jnp.transpose(attn, (0, 2, 1, 3)).reshape(B * S, D)

    h = x + pallas_matmul(attn, lp["wo"], out_dtype=jnp.float32).reshape(B, S, D)

    ff = pallas_ffn(h.reshape(B * S, D), lp["ffn_norm"], lp["w1"], lp["w3"],
                    lp["w2"], eps, out_dtype=jnp.float32)
    return h + ff.reshape(B, S, D)


def block_forward_ref(x, lp, start_pos, cos, sin, n_heads, eps):
    # Pure-JAX reference (original weight layout, interleaved RoPE); mirrors the
    # bf16-input / f32-accumulate matmul precision of the Pallas path.
    B, S, D = x.shape
    hd = D // n_heads
    x2 = x.reshape(B * S, D)

    xn = _rmsnorm_ref(x2, lp["attn_norm"], eps)
    xq = _bf16_dot(xn, lp["wq"]).reshape(B, S, n_heads, hd)
    xk = _bf16_dot(xn, lp["wk"]).reshape(B, S, n_heads, hd)
    xv = _bf16_dot(xn, lp["wv"]).reshape(B, S, n_heads, hd)
    xq, xk = apply_rotary_emb_interleaved(xq, xk, cos, sin)

    if start_pos > 0:
        zeros = jnp.zeros((B, start_pos, n_heads, hd), jnp.float32)
        keys = jnp.concatenate([zeros, xk], axis=1)
        values = jnp.concatenate([zeros, xv], axis=1)
    else:
        keys, values = xk, xv

    q = jnp.transpose(xq, (0, 2, 1, 3))
    k = jnp.transpose(keys, (0, 2, 1, 3))
    v = jnp.transpose(values, (0, 2, 1, 3))
    T = k.shape[2]

    if S > 1:
        m = jnp.triu(jnp.full((S, S), float("-inf"), jnp.float32), k=1)
        mask = jnp.concatenate([jnp.zeros((S, start_pos), jnp.float32), m], axis=1)
    else:
        mask = jnp.zeros((S, T), jnp.float32)

    scale = 1.0 / math.sqrt(hd)
    s = jnp.einsum("bhqd,bhkd->bhqk", q.astype(jnp.bfloat16), k.astype(jnp.bfloat16),
                   preferred_element_type=jnp.float32) * scale + mask[None, None]
    p = jax.nn.softmax(s, axis=-1)
    attn = jnp.einsum("bhqk,bhkd->bhqd", p.astype(jnp.bfloat16), v.astype(jnp.bfloat16),
                      preferred_element_type=jnp.float32)
    attn = jnp.transpose(attn, (0, 2, 1, 3)).reshape(B * S, D)

    h = x + _bf16_dot(attn, lp["wo"]).reshape(B, S, D)

    hn = _rmsnorm_ref(h.reshape(B * S, D), lp["ffn_norm"], eps)
    h1 = _bf16_dot(hn, lp["w1"])
    h3 = _bf16_dot(hn, lp["w3"])
    ff = _bf16_dot((h1 * jax.nn.sigmoid(h1)) * h3, lp["w2"]).reshape(B, S, D)
    return h + ff


def transformer_forward(tokens, params, cfg, start_pos=0, use_pallas=True,
                        pallas_params=None):
    B, S = tokens.shape
    D = cfg["dim"]
    eps = cfg["norm_eps"]
    H = cfg["n_heads"]

    h = params["emb"][tokens].astype(jnp.float32)             # embedding gather (glue)
    cos = params["cos"][start_pos:start_pos + S]
    sin = params["sin"][start_pos:start_pos + S]

    if use_pallas:
        for lp in pallas_params["layers"]:
            h = block_forward_pallas(h, lp, start_pos, cos, sin, H, eps)
        out = pallas_rmsnorm(h.reshape(B * S, D), params["norm_w"], eps)
    else:
        for lp in params["layers"]:
            h = block_forward_ref(h, lp, start_pos, cos, sin, H, eps)
        out = _rmsnorm_ref(h.reshape(B * S, D), params["norm_w"], eps)
    return out.reshape(B, S, D)


# ----------------------------- Parameters -----------------------------

def init_params(key, cfg):
    D = cfg["dim"]
    V = cfg["vocab_size"]
    hd = D // cfg["n_heads"]

    hidden = 4 * D
    hidden = int(2 * hidden / 3)
    mo = cfg["multiple_of"]
    hidden = mo * ((hidden + mo - 1) // mo)

    def nrm(k, shape, scale=0.02):
        return (scale * jax.random.normal(k, shape)).astype(jnp.float32)

    keys = jax.random.split(key, 2 + cfg["n_layers"])
    params = {
        "emb": nrm(keys[0], (V, D), 1.0),
        "norm_w": jnp.ones((D,), jnp.float32),
    }
    cos, sin = precompute_freqs(hd, cfg["max_seq_len"] * 2)
    params["cos"], params["sin"] = cos, sin

    layers = []
    for li in range(cfg["n_layers"]):
        ks = jax.random.split(keys[2 + li], 7)
        layers.append({
            "wq": nrm(ks[0], (D, D)),
            "wk": nrm(ks[1], (D, D)),
            "wv": nrm(ks[2], (D, D)),
            "wo": nrm(ks[3], (D, D)),
            "w1": nrm(ks[4], (D, hidden)),
            "w3": nrm(ks[5], (D, hidden)),
            "w2": nrm(ks[6], (hidden, D)),
            "attn_norm": jnp.ones((D,), jnp.float32),
            "ffn_norm": jnp.ones((D,), jnp.float32),
        })
    params["layers"] = layers
    return params


def prepare_pallas_params(params, cfg):
    """One-time weight prep: permute wq/wk columns for rotate-half RoPE,
    fuse wq|wk|wv into one (D, 3D) matrix, and cast weights to bf16."""
    D = cfg["dim"]
    H = cfg["n_heads"]
    hd = D // H
    half_perm = jnp.concatenate([jnp.arange(0, hd, 2), jnp.arange(1, hd, 2)])
    full_perm = (jnp.arange(H)[:, None] * hd + half_perm[None, :]).reshape(-1)

    layers = []
    for lp in params["layers"]:
        wq_p = lp["wq"][:, full_perm]
        wk_p = lp["wk"][:, full_perm]
        wqkv = jnp.concatenate([wq_p, wk_p, lp["wv"]], axis=1).astype(jnp.bfloat16)
        layers.append({
            "wqkv": wqkv,
            "wo": lp["wo"].astype(jnp.bfloat16),
            "w1": lp["w1"].astype(jnp.bfloat16),
            "w3": lp["w3"].astype(jnp.bfloat16),
            "w2": lp["w2"].astype(jnp.bfloat16),
            "attn_norm": lp["attn_norm"],
            "ffn_norm": lp["ffn_norm"],
        })
    return {"layers": layers}


# ----------------------------- Main -----------------------------

if __name__ == "__main__":
    cfg = dict(dim=32, n_layers=2, n_heads=4, vocab_size=64,
               multiple_of=16, norm_eps=1e-5, max_seq_len=16)
    B, S = 2, 8

    params = init_params(jax.random.PRNGKey(0), cfg)
    pparams = prepare_pallas_params(params, cfg)
    tokens = jax.random.randint(jax.random.PRNGKey(0), (B, S), 0,
                                cfg["vocab_size"], dtype=jnp.int32)

    out = transformer_forward(tokens, params, cfg, start_pos=0,
                              use_pallas=True, pallas_params=pparams)
    out = jax.block_until_ready(out)

    ref = transformer_forward(tokens, params, cfg, start_pos=0, use_pallas=False)
    ref = jax.block_until_ready(ref)

    assert out.shape == (B, S, cfg["dim"])
    assert bool(jnp.all(jnp.isfinite(out)))
    # bf16 MXU inputs (both paths) + approx reciprocal => modest tolerance.
    assert bool(jnp.allclose(out, ref, atol=2e-2, rtol=2e-2)), "mismatch vs JAX reference"

    print("KERNEL_OK")
</pallas_src>

<mosaic_0001>
module attributes {stable_mosaic.version = 11 : i64} {
  func.func @_norm_matmul_kernel(%arg0: i32, %arg1: i32, %arg2: memref<16x32xf32, #tpu.memory_space<vmem>>, %arg3: memref<1x32xf32, #tpu.memory_space<vmem>>, %arg4: memref<32x96xbf16, #tpu.memory_space<vmem>>, %arg5: memref<16x96xbf16, #tpu.memory_space<vmem>>) attributes {dimension_semantics = [#tpu.dimension_semantics<parallel>, #tpu.dimension_semantics<parallel>], iteration_bounds = array<i64: 1, 1>, scalar_prefetch = 0 : i64, scratch_operands = 0 : i64, tpu.core_type = #tpu.core_type<tc>, window_params = [{transform_indices = @transform_0, window_bounds = array<i64: 16, 32>}, {pipeline_mode = #tpu.pipeline_mode<synchronous>, transform_indices = @transform_1, window_bounds = array<i64: 1, 32>}, {transform_indices = @transform_2, window_bounds = array<i64: 32, 96>}, {transform_indices = @transform_3, window_bounds = array<i64: 16, 96>}]} {
    %c0 = arith.constant 0 : index
    %c0_0 = arith.constant 0 : index
    %0 = vector.load %arg2[%c0, %c0_0] : memref<16x32xf32, #tpu.memory_space<vmem>>, vector<16x32xf32>
    %1 = arith.mulf %0, %0 : vector<16x32xf32>
    %cst = arith.constant dense<0.000000e+00> : vector<16xf32>
    %2 = vector.multi_reduction <add>, %1, %cst [1] : vector<16x32xf32> to vector<16xf32>
    %3 = vector.shape_cast %2 : vector<16xf32> to vector<16x1xf32>
    %cst_1 = arith.constant 3.200000e+01 : f32
    %4 = vector.broadcast %cst_1 : f32 to vector<16x1xf32>
    %5 = arith.divf %3, %4 : vector<16x1xf32>
    %cst_2 = arith.constant 9.99999974E-6 : f32
    %6 = vector.broadcast %cst_2 : f32 to vector<16x1xf32>
    %7 = arith.addf %5, %6 : vector<16x1xf32>
    %8 = math.rsqrt %7 : vector<16x1xf32>
    %9 = vector.broadcast %8 : vector<16x1xf32> to vector<16x32xf32>
    %10 = arith.mulf %0, %9 : vector<16x32xf32>
    %c0_3 = arith.constant 0 : index
    %c0_4 = arith.constant 0 : index
    %11 = vector.load %arg3[%c0_3, %c0_4] : memref<1x32xf32, #tpu.memory_space<vmem>>, vector<1x32xf32>
    %12 = vector.broadcast %11 : vector<1x32xf32> to vector<16x32xf32>
    %13 = arith.mulf %10, %12 : vector<16x32xf32>
    %14 = arith.truncf %13 : vector<16x32xf32> to vector<16x32xbf16>
    %c0_5 = arith.constant 0 : index
    %c0_6 = arith.constant 0 : index
    %15 = vector.load %arg4[%c0_5, %c0_6] : memref<32x96xbf16, #tpu.memory_space<vmem>>, vector<32x96xbf16>
    %cst_7 = arith.constant dense<0.000000e+00> : vector<16x96xf32>
    %16 = tpu.matmul %14, %15, %cst_7 {dimension_numbers = #tpu.dot_dimension_numbers<[1], [0], [0], [1], [0, 0, 1, 1], [], []>} : vector<16x32xbf16>, vector<32x96xbf16>, vector<16x96xf32> -> vector<16x96xf32>
    %17 = arith.truncf %16 : vector<16x96xf32> to vector<16x96xbf16>
    %c0_8 = arith.constant 0 : index
    %c0_9 = arith.constant 0 : index
    %18 = vector.load %arg5[%c0_8, %c0_9] : memref<16x96xbf16, #tpu.memory_space<vmem>>, vector<16x96xbf16>
    tpu.vector_store %arg5[%c0_8, %c0_9], %17 {strides = array<i32>} : memref<16x96xbf16, #tpu.memory_space<vmem>>, vector<16x96xbf16>,
    return
  }
  func.func @transform_0(%arg0: i32, %arg1: i32) -> (i32, i32) {
    %c0_i32 = arith.constant 0 : i32
    %c0_i32_0 = arith.constant 0 : i32
    return %arg0, %c0_i32 : i32, i32
  }
  func.func @transform_1(%arg0: i32, %arg1: i32) -> (i32, i32) {
    %c0_i32 = arith.constant 0 : i32
    %c0_i32_0 = arith.constant 0 : i32
    %c0_i32_1 = arith.constant 0 : i32
    return %c0_i32, %c0_i32_0 : i32, i32
  }
  func.func @transform_2(%arg0: i32, %arg1: i32) -> (i32, i32) {
    %c0_i32 = arith.constant 0 : i32
    %c0_i32_0 = arith.constant 0 : i32
    return %c0_i32, %arg1 : i32, i32
  }
  func.func @transform_3(%arg0: i32, %arg1: i32) -> (i32, i32) {
    %c0_i32 = arith.constant 0 : i32
    return %arg0, %arg1 : i32, i32
  }
}

</mosaic_0001>

<bundles_post_ra>
// kernel: tpu_custom_call.1
= control target key start
LH: loop header
LB: loop body
LE: loop exit
PB: predicated region body
PF: predicated region fallthrough
CT: control target
= control target key end

     0   :  { %8 = vsyncpa [#allocation3], 0  ;;  %s346_s0 = inlined_call_operand.hbm [shape: f32[16,32], index: 0, kind: input, shape index: {}]   ;;  %s347_s1 = inlined_call_operand.vmem [shape: f32[1,32], index: 1, kind: input, shape index: {}]   ;;  %s348_s2 = inlined_call_operand.hbm [shape: bf16[32,96], index: 2, kind: input, shape index: {}]   ;;  %s349_s3 = inlined_call_operand.hbm [shape: bf16[16,96], index: 3, kind: output, shape index: {}]  }
   0x1   :  { %9 = vsyncpa [#allocation6], 0 }
   0x2   :  { %10 = vsyncpa [#allocation4], 0  ;;  %s269_s12 = smov [#allocation2]   ;;  %s197_s16 = scalar_lea.hbm %s346_s0, 256 }
   0x3   :  { %s16_s13 = sshll.u32 %s269_s12, 4  ;;  %p198_p0 = scmp.ne.s32.totalorder %s346_s0, %s197_s16  ;;  %s17_s13 = int_to_ptr.vmem [resolvable:$true] %s16_s13 }
   0x4   :  { %p201_p1 = scmp.lt.u32.totalorder %s197_s16, %s346_s0 }
   0x6   :  { %p203_p2 = pnand %p201_p1, %p198_p0 }
   0x8   :  { %206 = shalt.err (!%p203_p2)
}
   0x9   :  { %s207_s21 = scalar_lea.vmem %s17_s13, 256  ;;  %p212_p4 = scmp.lt.s32.totalorder %s17_s13, %s17_s13 }
   0xa   :  { %p208_p3 = scmp.ne.s32.totalorder %s17_s13, %s207_s21  ;;  %p213_p5 = scmp.lt.s32.totalorder %s207_s21, %s207_s21 }
   0xc   :  { %p214_p6 = por %p213_p5, %p212_p4 }
   0xe   :  { %p215_p7 = pnand %p214_p6, %p208_p3 }
  0x10   :  { %218 = shalt.err (!%p215_p7)
}
  0x11   :  { %s270_s22 = smov 128   ;;  %s271_s23 = smov 8  }
  0x12   :  { %22 = dma.hbm_to_vmem [thread:$0]  %s346_s0, 256, %s17_s13, [#allocation3], %s270_s22, %s270_s22, %s271_s23  }
  0x13   :  { %s272_s26 = smov [#allocation5]   ;;  %s219_s30 = scalar_lea.hbm %s348_s2, 256 }
  0x14   :  { %s30_s27 = sshll.u32 %s272_s26, 4  ;;  %p220_p8 = scmp.ne.s32.totalorder %s348_s2, %s219_s30  ;;  %s31_s27 = int_to_ptr.vmem [resolvable:$true] %s30_s27 }
  0x15   :  { %p223_p9 = scmp.lt.u32.totalorder %s219_s30, %s348_s2 }
  0x17   :  { %p225_p10 = pnand %p223_p9, %p220_p8 }
  0x19   :  { %228 = shalt.err (!%p225_p10)
}
  0x1a   :  { %s229_s8 = scalar_lea.vmem %s31_s27, 256  ;;  %p234_p12 = scmp.lt.s32.totalorder %s31_s27, %s31_s27 }
  0x1b   :  { %p230_p11 = scmp.ne.s32.totalorder %s31_s27, %s229_s8  ;;  %p235_p13 = scmp.lt.s32.totalorder %s229_s8, %s229_s8 }
  0x1d   :  { %p236_p0 = por %p235_p13, %p234_p12 }
  0x1f   :  { %p237_p1 = pnand %p236_p0, %p230_p11 }
  0x21   :  { %240 = shalt.err (!%p237_p1)
}
  0x22   :  { %s273_s0 = smov 64   ;;  %s274_s9 = smov 4  }
  0x23   :  { %36 = dma.hbm_to_vmem [thread:$0]  %s348_s2, 256, %s31_s27, [#allocation6], %s273_s0, %s273_s0, %s274_s9  }
  0x24   :  { %263 = dma.done.wait [#allocation3], 256  }
  0x25   :  { %264 = vsyncadd [#allocation3], 4294967040 }
  0x26   :  { %265 = dma.done.wait [#allocation6], 256  }
  0x27   :  { %266 = vsyncadd [#allocation6], 4294967040  ;;  %v44_v0 = vld [vmem:[#allocation2] sm:$0xff]  ;;  %vm48_vm0 = vcmask 261120   ;;  %v45_v1 = vld [vmem:[#allocation2 + $0x8] sm:$0xff]  ;;  %v275_v7 = vmov 0.0  }
  0x28   :  { %v46_v2 = vmul.f32 %v44_v0, %v44_v0  ;;  %v47_v3 = vmul.f32 %v45_v1, %v45_v1  ;;  %v191_v6 = vld [vmem:[#allocation5] sm:$0xff]   ;;  %174 = vmatprep.subr.bf16.mxu0 %v275_v7  ;;  %vm276_vm1 = vmmov 0   ;;  %v192_v8 = vld [vmem:[#allocation5 + $0x8] sm:$0xff]   ;;  %v163_v18 = vld [vmem:[%s347_s1] ss:$0 sm:$0xff]  ;;  %vm142_vm2 = vcmask 781312  }
  0x29   :  { %178 = vmatprep.mubr.msk.bf16.mxu0 %vm276_vm1, %v275_v7  ;;  %175 = vmatpush3.bf16.msra.mxu0 %v191_v6  ;;  %s277_s13 = smov [#allocation7]  }
  0x2a   :  { %v49_v4 = vsel %vm48_vm0, %v46_v2, 0.0  ;;  %v52_v5 = vsel %vm48_vm0, %v47_v3, 0.0  ;;  %176 = vmatprep.subr.bf16.mxu0 %v275_v7  ;;  %s150_s14 = sshll.u32 %s277_s13, 4  ;;  %s151_s14 = int_to_ptr.vmem [resolvable:$true] %s150_s14 }
  0x2b   :  { %50 = vadd.xlane.f32.xlu0 %v49_v4  ;;  %s241_s15 = scalar_lea.vmem %s151_s14, 128  ;;  %p246_p3 = scmp.lt.s32.totalorder %s151_s14, %s151_s14 }
  0x2c   :  { %p242_p2 = scmp.ne.s32.totalorder %s151_s14, %s241_s15  ;;  %p247_p4 = scmp.lt.s32.totalorder %s241_s15, %s241_s15 }
  0x2d   :  { %177 = vmatpush3.bf16.msra.mxu0 %v192_v8 }
  0x2e   :  { %p248_p5 = por %p247_p4, %p246_p3 }
  0x2f   :  { %53 = vadd.xlane.f32.xlu0 %v52_v5 }
  0x30   :  { %p249_p6 = pnand %p248_p5, %p242_p2 }
  0xb8   :  { %v51_v9 = vpop.xlane.xlu0 %50 }
  0xb9   :  { %v56_v10 = vmul.f32 0.03125, %v51_v9 }
  0xbb   :  { %v58_v11 = vadd.f32 1e-05, %v56_v10 }
  0xbc   :  { %v54_v12 = vpop.xlane.xlu0 %53 }
  0xbd   :  { %193 = vrsqrt.f32 %v58_v11  ;;  %v57_v13 = vmul.f32 0.03125, %v54_v12 }
  0xbf   :  { %v59_v14 = vadd.f32 1e-05, %v57_v13 }
  0xc1   :  { %195 = vrsqrt.f32 %v59_v14 }
  0xc7   :  { %v194_v15 = vpop.eup %193 }
  0xc8   :  { %v62_v16 = vmul.f32 %v194_v15, %v44_v0 }
  0xca   :  { %v71_v20 = vmul.f32 %v163_v18, %v62_v16 }
  0xcb   :  { %v196_v17 = vpop.eup %195 }
  0xcc   :  { %v63_v19 = vmul.f32 %v196_v17, %v45_v1 }
  0xce   :  { %v72_v21 = vmul.f32 %v163_v18, %v63_v19 }
  0xd0   :  { %v73_v22 = vpack.c.bf16 %v72_v21, %v71_v20 }
  0xd2   :  { %179 = vmatmul.mubr.msk.bf16.vlgmr.msra.gmra.mrb[0].mxu0 %vm48_vm0, %v73_v22 }
 0x1a5   :  { %v127_v23 = vpop.f32.mrb[0].mxu0 }
 0x1a6   :  { %v169_v24 = vpack.c.bf16 %v127_v23, %v127_v23  ;;  %v180_v25 = vpop.f32.mrb[1].mxu0 }
 0x1a7   :  { %v130_v26 = vpop.f32.mrb[2].mxu0 }
 0x1a8   :  { %v170_v27 = vpack.c.bf16 %v130_v26, %v130_v26  ;;  %v181_v28 = vpop.f32.mrb[3].mxu0  ;;  %143 = vst.msk [vmem:[#allocation7] sm:$0xf] %vm142_vm2, %v169_v24 }
 0x1aa   :  { %144 = vst.msk [vmem:[#allocation7 + $0x4] sm:$0xf] %vm142_vm2, %v170_v27 }
 0x1ab   :  { %252 = shalt.err (!%p249_p6)
}
 0x1ac   :  { %s253_s17 = scalar_lea.hbm %s349_s3, 128 }
 0x1ad   :  { %p254_p7 = scmp.ne.s32.totalorder %s349_s3, %s253_s17  ;;  %p257_p8 = scmp.lt.u32.totalorder %s253_s17, %s349_s3 }
 0x1af   :  { %p259_p9 = pnand %p257_p8, %p254_p7 }
 0x1b1   :  { %262 = shalt.err (!%p259_p9)
}
 0x1b2   :  { %156 = dma.vmem_to_hbm [thread:$0]  %s151_s14, 128, %s349_s3, [#allocation4], %s273_s0, %s273_s0, %s274_s9  }
 0x1b3   :  { %267 = dma.done.wait [#allocation4], 128  }
 0x1b4   :  { %268 = vsyncadd [#allocation4], 4294967168 }
 0x1b5   :  { %160 = vsyncpa [#allocation3], 1 }
 0x1b6   :  { %161 = vsyncpa [#allocation6], 1 }
 0x1b7   :  { %162 = vsyncpa [#allocation4], 1 }

</bundles_post_ra>
